<compile_context>
chip_gen: v5e
topology: v5e:2x2
jax: 0.10.0
libtpu: 0.0.40
codegen_flags: <defaults>
</compile_context>

<pallas_src>
import jax
import jax.numpy as jnp
from jax.experimental import pallas as pl
from jax.experimental.pallas import tpu as pltpu

_LANES = 512            # lane-dense width (multiple of 128)
_MAX_BLOCK_ROWS = 1024  # 1024 x 512 x 4B = 2 MiB per-input tile


def _round_up(x: int, m: int) -> int:
    return ((x + m - 1) // m) * m


def _cdiv(a: int, b: int) -> int:
    return -(-a // b)


def _sse_kernel(y_ref, mu_ref, o_ref, acc_ref):
    """Accumulate sum((y-mu)^2) partials into a vector VMEM accumulator."""
    k = pl.program_id(1)  # sequential (reduction) axis

    @pl.when(k == 0)
    def _():
        acc_ref[...] = jnp.zeros_like(acc_ref)

    d = y_ref[...].astype(jnp.float32) - mu_ref[...].astype(jnp.float32)
    acc_ref[...] += d * d

    @pl.when(k == pl.num_programs(1) - 1)
    def _():
        a = acc_ref[...]
        # Fold (block_rows, C) -> (8, C) tile-aligned partial; the final
        # cross-lane reduce happens once in JAX on this tiny output.
        o_ref[...] = jnp.sum(a.reshape(-1, 8, a.shape[-1]), axis=0)


def _fused_sse_partials(y2d: jax.Array, mu2d: jax.Array,
                        block_rows: int, kpc: int) -> jax.Array:
    """One pallas_call producing (2*8, C) per-core partial sums of (y-mu)^2."""
    _, C = y2d.shape
    tile_bytes = block_rows * C * 4
    # 2 inputs x 2 pipeline buffers + accumulator scratch + output + headroom.
    vmem_budget = min(48 * 1024 * 1024, 4 * tile_bytes + tile_bytes + 8 * 1024 * 1024)

    in_spec = pl.BlockSpec((block_rows, C), lambda p, k: (p * kpc + k, 0))
    out_spec = pl.BlockSpec((8, C), lambda p, k: (p, 0))

    return pl.pallas_call(
        _sse_kernel,
        out_shape=jax.ShapeDtypeStruct((2 * 8, C), jnp.float32),
        grid_spec=pltpu.PrefetchScalarGridSpec(
            num_scalar_prefetch=0,
            grid=(2, kpc),
            in_specs=[in_spec, in_spec],
            out_specs=out_spec,
            scratch_shapes=[pltpu.VMEM((block_rows, C), jnp.float32)],
        ),
        compiler_params=pltpu.CompilerParams(
            dimension_semantics=("parallel", "arbitrary"),
            vmem_limit_bytes=int(vmem_budget),
        ),
    )(y2d, mu2d)


def simple_loss(y: list, mu: list) -> jax.Array:
    """JAX/Pallas equivalent of Simple_Loss.forward(y, mu)."""
    assert len(y) == len(mu) and len(y) > 0

    count = 0
    flat_y, flat_mu = [], []
    for yi, mi in zip(y, mu):
        assert yi.shape == mi.shape
        count += yi.shape[0]  # torch len() semantics (first-dim size)
        flat_y.append(yi.reshape(-1).astype(jnp.float32))
        flat_mu.append(mi.reshape(-1).astype(jnp.float32))

    yf = jnp.concatenate(flat_y)
    mf = jnp.concatenate(flat_mu)
    n = yf.shape[0]

    C = _LANES
    r_needed = max(1, _cdiv(n, C))                 # rows of width C needed
    half = _cdiv(r_needed, 2)                      # rows per TensorCore
    kpc = max(1, _cdiv(half, _MAX_BLOCK_ROWS))     # grid steps per core
    block_rows = min(_MAX_BLOCK_ROWS, _round_up(_cdiv(half, kpc), 8))
    r_padded = 2 * kpc * block_rows                # >= r_needed by construction

    pad = r_padded * C - n
    if pad:
        # Zero padding on BOTH arrays contributes 0 to the SSE.
        yf = jnp.pad(yf, (0, pad))
        mf = jnp.pad(mf, (0, pad))

    y2d = yf.reshape(r_padded, C)
    m2d = mf.reshape(r_padded, C)

    partials = _fused_sse_partials(y2d, m2d, block_rows, kpc)
    loss = jnp.sum(partials)
    return loss / jnp.float32(count)


if __name__ == "__main__":
    key = jax.random.PRNGKey(0)
    k1, k2, k3, k4, k5, k6 = jax.random.split(key, 6)

    # A small heterogeneous list of tensors, like the PyTorch module accepts.
    y = [
        jax.random.normal(k1, (2, 4, 16, 16), dtype=jnp.float32),
        jax.random.normal(k2, (16, 128), dtype=jnp.float32),
        jax.random.normal(k3, (3, 64), dtype=jnp.float32),
    ]
    mu = [
        jax.random.normal(k4, (2, 4, 16, 16), dtype=jnp.float32),
        jax.random.normal(k5, (16, 128), dtype=jnp.float32),
        jax.random.normal(k6, (3, 64), dtype=jnp.float32),
    ]

    out = simple_loss(y, mu)
    out = jax.block_until_ready(out)

    # Pure-JAX reference check (same semantics as the torch module).
    ref_loss = sum(jnp.sum((yi - mi) ** 2) for yi, mi in zip(y, mu))
    ref_count = sum(yi.shape[0] for yi in y)
    ref = ref_loss / ref_count
    assert jnp.allclose(out, ref, rtol=1e-5, atol=1e-5), (out, ref)

    print("KERNEL_OK")
</pallas_src>

<mosaic_0001>
module attributes {stable_mosaic.version = 11 : i64} {
  func.func @_sse_kernel(%arg0: i32, %arg1: i32, %arg2: memref<8x512xf32, #tpu.memory_space<vmem>>, %arg3: memref<8x512xf32, #tpu.memory_space<vmem>>, %arg4: memref<8x512xf32, #tpu.memory_space<vmem>>, %arg5: memref<8x512xf32, #tpu.memory_space<vmem>>) attributes {dimension_semantics = [#tpu.dimension_semantics<parallel>, #tpu.dimension_semantics<arbitrary>], iteration_bounds = array<i64: 2, 1>, scalar_prefetch = 0 : i64, scratch_operands = 1 : i64, tpu.core_type = #tpu.core_type<tc>, window_params = [{transform_indices = @transform_0, window_bounds = array<i64: 8, 512>}, {transform_indices = @transform_1, window_bounds = array<i64: 8, 512>}, {transform_indices = @transform_2, window_bounds = array<i64: 8, 512>}]} {
    %c0_i32 = arith.constant 0 : i32
    %0 = arith.cmpi eq, %arg1, %c0_i32 : i32
    %1 = arith.extui %0 : i1 to i32
    %c0_i32_0 = arith.constant 0 : i32
    %2 = arith.cmpi ne, %1, %c0_i32_0 : i32
    scf.if %2 {
      %cst = arith.constant 0.000000e+00 : f32
      %13 = vector.broadcast %cst : f32 to vector<8x512xf32>
      %c0_10 = arith.constant 0 : index
      %c0_11 = arith.constant 0 : index
      %14 = vector.load %arg5[%c0_10, %c0_11] : memref<8x512xf32, #tpu.memory_space<vmem>>, vector<8x512xf32>
      tpu.vector_store %arg5[%c0_10, %c0_11], %13 {strides = array<i32>} : memref<8x512xf32, #tpu.memory_space<vmem>>, vector<8x512xf32>,
    } else {
    }
    %c0 = arith.constant 0 : index
    %c0_1 = arith.constant 0 : index
    %3 = vector.load %arg2[%c0, %c0_1] : memref<8x512xf32, #tpu.memory_space<vmem>>, vector<8x512xf32>
    %c0_2 = arith.constant 0 : index
    %c0_3 = arith.constant 0 : index
    %4 = vector.load %arg3[%c0_2, %c0_3] : memref<8x512xf32, #tpu.memory_space<vmem>>, vector<8x512xf32>
    %5 = arith.subf %3, %4 : vector<8x512xf32>
    %c0_4 = arith.constant 0 : index
    %c0_5 = arith.constant 0 : index
    %6 = vector.load %arg5[%c0_4, %c0_5] : memref<8x512xf32, #tpu.memory_space<vmem>>, vector<8x512xf32>
    %7 = arith.mulf %5, %5 : vector<8x512xf32>
    %8 = arith.addf %6, %7 : vector<8x512xf32>
    %c0_6 = arith.constant 0 : index
    %c0_7 = arith.constant 0 : index
    %9 = vector.load %arg5[%c0_6, %c0_7] : memref<8x512xf32, #tpu.memory_space<vmem>>, vector<8x512xf32>
    tpu.vector_store %arg5[%c0_6, %c0_7], %8 {strides = array<i32>} : memref<8x512xf32, #tpu.memory_space<vmem>>, vector<8x512xf32>,
    %c0_i32_8 = arith.constant 0 : i32
    %10 = arith.cmpi eq, %arg1, %c0_i32_8 : i32
    %11 = arith.extui %10 : i1 to i32
    %c0_i32_9 = arith.constant 0 : i32
    %12 = arith.cmpi ne, %11, %c0_i32_9 : i32
    scf.if %12 {
      %c0_10 = arith.constant 0 : index
      %c0_11 = arith.constant 0 : index
      %13 = vector.load %arg5[%c0_10, %c0_11] : memref<8x512xf32, #tpu.memory_space<vmem>>, vector<8x512xf32>
      %14 = vector.shape_cast %13 : vector<8x512xf32> to vector<1x8x512xf32>
      %cst = arith.constant dense<0.000000e+00> : vector<8x512xf32>
      %15 = vector.multi_reduction <add>, %14, %cst [0] : vector<1x8x512xf32> to vector<8x512xf32>
      %c0_12 = arith.constant 0 : index
      %c0_13 = arith.constant 0 : index
      %16 = vector.load %arg4[%c0_12, %c0_13] : memref<8x512xf32, #tpu.memory_space<vmem>>, vector<8x512xf32>
      tpu.vector_store %arg4[%c0_12, %c0_13], %15 {strides = array<i32>} : memref<8x512xf32, #tpu.memory_space<vmem>>, vector<8x512xf32>,
    } else {
    }
    return
  }
  func.func @transform_0(%arg0: i32, %arg1: i32) -> (i32, i32) {
    %c1_i32 = arith.constant 1 : i32
    %0 = arith.muli %arg0, %c1_i32 : i32
    %1 = arith.addi %0, %arg1 : i32
    %c0_i32 = arith.constant 0 : i32
    %c0_i32_0 = arith.constant 0 : i32
    return %1, %c0_i32 : i32, i32
  }
  func.func @transform_1(%arg0: i32, %arg1: i32) -> (i32, i32) {
    %c1_i32 = arith.constant 1 : i32
    %0 = arith.muli %arg0, %c1_i32 : i32
    %1 = arith.addi %0, %arg1 : i32
    %c0_i32 = arith.constant 0 : i32
    %c0_i32_0 = arith.constant 0 : i32
    return %1, %c0_i32 : i32, i32
  }
  func.func @transform_2(%arg0: i32, %arg1: i32) -> (i32, i32) {
    %c0_i32 = arith.constant 0 : i32
    %c0_i32_0 = arith.constant 0 : i32
    return %arg0, %c0_i32 : i32, i32
  }
}

</mosaic_0001>

<bundles_post_ra>
// kernel: tpu_custom_call.1
= control target key start
LH: loop header
LB: loop body
LE: loop exit
PB: predicated region body
PF: predicated region fallthrough
CT: control target
= control target key end

     0   :  { %7 = vsyncpa [#allocation4], 0  ;;  %s773_s0 = inlined_call_operand.hbm [shape: f32[16,512], index: 0, kind: input, shape index: {}]   ;;  %s774_s1 = inlined_call_operand.hbm [shape: f32[16,512], index: 1, kind: input, shape index: {}]   ;;  %s775_s2 = inlined_call_operand.hbm [shape: f32[16,512], index: 2, kind: output, shape index: {}]  }
   0x1   :  { %9 = vsyncpa [#allocation4 + $0x1], 0 }
   0x2   :  { %10 = vsyncpa [#allocation7], 0 }
   0x3   :  { %12 = vsyncpa [#allocation7 + $0x1], 0 }
   0x4   :  { %13 = vsyncpa [#allocation5], 0 }
   0x5   :  { %15 = vsyncpa [#allocation5 + $0x1], 0  ;;  %s645_s9 = smov 0   ;;  %s647_s10 = smov 0  }
   0x6   :  { %s649_s11 = smov 0   ;;  %s651_s12 = smov 0  }
   0x7   :  { %s653_s13 = smov 0   ;;  %s655_s14 = smov 0  }
   0x8 LB: > { %s393_s15 = sadd.s32 4294967295, %s628_s14   ;;  %s394_s16 = sadd.s32 4294967294, %s628_s14   ;;  %s628_s14 = sphi %s655_s14, %s21_s14   ;;  %s624_s13 = sphi %s653_s13, %s784_s13   ;;  %s620_s12 = sphi %s651_s12, %s783_s12   ;;  %s616_s11 = sphi %s649_s11, %s782_s11   ;;  %s612_s10 = sphi %s647_s10, %s781_s10   ;;  %s608_s9 = sphi %s645_s9, %s780_s9  }
   0x9   : > { %s33_s17 = sadd.s32 1, %s624_s13  ;;  %s42_s18 = sadd.s32 1, %s616_s11 }
   0xa   : > { %p35_p0 = scmp.ge.s32.totalorder %s33_s17, 2  ;;  %p49_p1 = scmp.ne.s32.totalorder %s616_s11, %s612_s10 }
   0xb   : > { %p50_p2 = scmp.eq.s32.totalorder %s628_s14, 0  ;;  %p55_p3 = scmp.ne.s32.totalorder %s612_s10, %s608_s9 }
   0xc   : > { %s786_s17 = smov (%p35_p0, %s33_s17), 0  ;;  %p56_p5 = scmp.eq.s32.totalorder %s393_s15, 0 }
   0xd   : > { %p686_p4 = por %p50_p2, %p49_p1  ;;  %s39_s20 = ssub.s32 %s624_s13, %s786_s17 }
   0xe   : > { %p107_p6 = scmp.eq.s32.totalorder %s393_s15, 1  ;;  %p40_p7 = scmp.eq.s32.totalorder %s39_s20, 0 }
   0xf   : > { %p692_p8 = por %p56_p5, %p55_p3  ;;  %p113_p10 = scmp.eq.s32.totalorder %s394_s16, 1 }
  0x10   : > { %p696_p9 = por %p107_p6, %p49_p1  ;;  %p396_p12 = scmp.ge.s32.totalorder %s628_s14, 2 }
  0x11   : > { %s701_s23 = scalar_select %p40_p7, %s616_s11, %s42_s18  }
  0x12   : > { %p703_p11 = por %p113_p10, %p55_p3  ;;  %p432_p13 = scmp.lt.s32.totalorder %s628_s14, 2 }
  0x13   : > { %s133_s25 = sand.u32 1, %s616_s11   ;;  %s412_s27 = sshll.u32 %s624_s13, 5 }
  0x14   : > { %s397_s26 = sshll.u32 %s133_s25, 5  ;;  %s143_s30 = scalar_lea.hbm %s773_s0, %s412_s27 }
  0x15   : > { %s137_s3 = scalar_lea.vmem [#allocation3], %s397_s26  ;;  %s145_s5 = sshll.u32 %s143_s30, 4  ;;  %s146_s5 = int_to_ptr.hbm [resolvable:$true] %s145_s5 }
  0x16   : > { %s147_s4 = sshll.u32 %s137_s3, 4  ;;  %p422_p0 = pnand %p432_p13, %p686_p4  ;;  %s148_s4 = int_to_ptr.vmem [resolvable:$true] %s147_s4 }
  0x17   : > { %p403_p1 = scmp.ge.s32.totalorder %s628_s14, 1  ;;  %p173_p2 = scmp.lt.s32.totalorder %s628_s14, 3 }
  0x18   : > { %s134_s6 = scalar_lea.sflag [#allocation4], %s133_s25  ;;  %s164_s15 = scalar_lea.hbm %s774_s1, %s412_s27 }
  0x19   : > { %424 = dma.hbm_to_vmem [thread:$0]  (!%p422_p0), %s146_s5, 512, %s148_s4, %s134_s6  }
  0x1a   : > { %p174_p3 = pnand %p403_p1, %p173_p2  ;;  %s158_s16 = scalar_lea.vmem [#allocation6], %s397_s26 }
  0x1b   : > { %s168_s18 = sshll.u32 %s158_s16, 4  ;;  %s166_s20 = sshll.u32 %s164_s15, 4  ;;  %s169_s18 = int_to_ptr.vmem [resolvable:$true] %s168_s18  ;;  %s167_s20 = int_to_ptr.hbm [resolvable:$true] %s166_s20 }
  0x1c   : > { %s155_s28 = scalar_lea.sflag [#allocation7], %s133_s25  ;;  %177 = sbr.rel (%p174_p3) target bundleno = 51 (0x33), region = 28 }
  0x1d   : > { %427 = dma.hbm_to_vmem [thread:$0]  (!%p422_p0), %s167_s20, 512, %s169_s18, %s155_s28  }
  0x1e   : > { %s722_s19 = sand.u32 (!%p174_p3), 1, %s612_s10  }
  0x1f   : > { %s404_s29 = sshll.u32 (!%p174_p3), %s722_s19, 5  ;;  %s180_s30 = scalar_lea.sflag (!%p174_p3), [#allocation4], %s722_s19 }
  0x20   : > { %s183_s3 = scalar_lea.vmem (!%p174_p3), [#allocation3], %s404_s29 }
  0x21   : > { %595 = dma.done.wait (%p692_p8), %s180_s30, 512  }
  0x22   : > { %597 = vsyncadd (%p692_p8), %s180_s30, 4294966784  ;;  %s190_s26 = scalar_lea.sflag [#allocation7], %s722_s19  ;;  %s193_s25 = scalar_lea.vmem [#allocation6], %s404_s29 }
  0x23   : > { %599 = dma.done.wait (%p692_p8), %s190_s26, 512  }
  0x24   : > { %601 = vsyncadd (%p692_p8), %s190_s26, 4294966784  ;;  %s414_s27 = sshll.u32 %s620_s12, 5  ;;  %v230_v0 = vld [vmem:[%s183_s3] sm:$0xff]  ;;  %v231_v2 = vld [vmem:[%s183_s3 + $0x8] sm:$0xff]  ;;  %s219_s21 = scalar_lea.vmem [#allocation8], %s404_s29 }
  0x25   : > { %v234_v1 = vld [vmem:[%s193_s25] sm:$0xff]  ;;  %s285_s6 = scalar_lea.hbm %s775_s2, %s414_s27  ;;  %v235_v4 = vld [vmem:[%s193_s25 + $0x8] sm:$0xff]  ;;  %v232_v5 = vld [vmem:[%s183_s3 + $0x10] sm:$0xff]  ;;  %s287_s7 = sshll.u32 %s219_s21, 4  ;;  %s288_s7 = int_to_ptr.vmem [resolvable:$true] %s287_s7 }
  0x26   : > { %v238_v3 = vsub.f32 %v230_v0, %v234_v1  ;;  %v236_v6 = vld [vmem:[%s193_s25 + $0x10] sm:$0xff]  ;;  %v239_v7 = vsub.f32 %v231_v2, %v235_v4  ;;  %v233_v9 = vld [vmem:[%s183_s3 + $0x18] sm:$0xff]  ;;  %s289_s12 = sshll.u32 %s285_s6, 4  ;;  %s274_s8 = scalar_lea.sflag [#allocation5], %s722_s19  ;;  %s290_s12 = int_to_ptr.hbm [resolvable:$true] %s289_s12 }
  0x27   : > { %v240_v8 = vsub.f32 %v232_v5, %v236_v6  ;;  %v237_v10 = vld [vmem:[%s193_s25 + $0x18] sm:$0xff]  ;;  %s556_s15 = sshra.s32 %s290_s12, 4  ;;  %s562_s28 = scalar_lea.hbm %s775_s2, 64  ;;  %s557_s15 = int_to_ptr.hbm [resolvable:$true] %s556_s15 }
  0x28   : > { %v246_v11 = vmul.f32 %v238_v3, %v238_v3  ;;  %v241_v12 = vsub.f32 %v233_v9, %v237_v10  ;;  %v247_v13 = vmul.f32 %v239_v7, %v239_v7  ;;  %s558_s16 = scalar_lea.hbm %s557_s15, 32  ;;  %p563_p7 = scmp.lt.s32.totalorder %s557_s15, %s775_s2 }
  0x29   : > { %v248_v14 = vmul.f32 %v240_v8, %v240_v8  ;;  %p559_p4 = scmp.ne.s32.totalorder %s557_s15, %s558_s16  ;;  %p564_p8 = scmp.lt.s32.totalorder %s562_s28, %s558_s16 }
  0x2a   : > { %269 = vst [vmem:[%s219_s21] sm:$0xff] %v246_v11  ;;  %v249_v15 = vmul.f32 %v241_v12, %v241_v12 }
  0x2b   : > { %270 = vst [vmem:[%s219_s21 + $0x8] sm:$0xff] %v247_v13  ;;  %p560_p5 = pnand %p559_p4, %p696_p9  ;;  %p565_p10 = por %p564_p8, %p563_p7 }
  0x2c   : > { %271 = vst [vmem:[%s219_s21 + $0x10] sm:$0xff] %v248_v14 }
  0x2d   : > { %272 = vst [vmem:[%s219_s21 + $0x18] sm:$0xff] %v249_v15  ;;  %p561_p6 = pneg %p560_p5 }
  0x2f   : > { %p566_p13 = pnand %p565_p10, %p561_p6 }
  0x31   : > { %569 = shalt.err (!%p566_p13)
}
  0x32   : > { %419 = dma.vmem_to_hbm [thread:$0]  (%p696_p9), %s288_s7, 512, %s290_s12, %s274_s8  }
  0x33 PF: > { %s301_s19 = sand.u32 1, %s608_s9   ;;  %p429_p0 = pnand %p396_p12, %p703_p11 }
  0x34   : > { %s302_s3 = scalar_lea.sflag [#allocation5], %s301_s19 }
  0x35   : > { %p430_p1 = pneg %p429_p0 }
  0x37   : > { %603 = dma.done.wait (%p430_p1), %s302_s3, 512  }
  0x38   : > { %605 = vsyncadd (%p430_p1), %s302_s3, 4294966784  ;;  %s21_s14 = sadd.s32 1, %s628_s14   ;;  %s780_s9 = smov %s612_s10 }
  0x39   : > { %p18_p2 = scmp.ge.s32.totalorder %s21_s14, 4   ;;  %s781_s10 = smov %s616_s11 }
  0x3a   : > { %s782_s11 = smov %s701_s23  ;;  %s783_s12 = smov %s624_s13 }
  0x3b   : > { %s784_s13 = smov %s786_s17  ;;  %20 = sbr.rel (!%p18_p2) target bundleno = 8 (0x8), region = 94 }
  0x40   :  { %308 = vsyncpa [#allocation4], 1 }
  0x41   :  { %310 = vsyncpa [#allocation4 + $0x1], 1 }
  0x42   :  { %311 = vsyncpa [#allocation7], 1 }
  0x43   :  { %313 = vsyncpa [#allocation7 + $0x1], 1 }
  0x44   :  { %314 = vsyncpa [#allocation5], 1 }
  0x45   :  { %316 = vsyncpa [#allocation5 + $0x1], 1 }

</bundles_post_ra>
